<compile_context>
chip_gen: v7x
topology: tpu7x:2x2x1
jax: 0.10.0
libtpu: 0.0.40
codegen_flags: <defaults>
</compile_context>

<pallas_src>
import functools

import jax
import jax.numpy as jnp
import numpy as np
from jax.experimental import pallas as pl
from jax.experimental.pallas import tpu as pltpu


_VMEM_BUDGET = 10 * 1024 * 1024   # stay well inside the default scoped VMEM


def _round_up(x, m):
    return ((x + m - 1) // m) * m


def _choose_tiles(M, P, d, C, tm, tp):
    """Pick (row tile, neuron tile) sizes that fit comfortably in VMEM."""
    Cd = C * d
    P128 = _round_up(P, 128)

    def vmem_bytes(tm_, tp_):
        return (tm_ * Cd * 4            # B accumulator scratch (f32)
                + 2 * tm_ * tp_ * 2     # double-buffered sign-pattern tiles
                + 2 * tp_ * Cd * 2      # double-buffered (v - w) panels
                + 2 * tm_ * d * 2       # double-buffered x tiles
                + 2 * tm_ * C * 4)      # output tiles

    if tm is None:
        tm = min(1024, _round_up(M, 8))
    if tp is None:
        if vmem_bytes(tm, P128) <= _VMEM_BUDGET:
            tp = P128                   # single neuron tile: (v-w) fetched once
        else:
            tp = min(512, P128)
            while tm > 8 and vmem_bytes(tm, tp) > _VMEM_BUDGET:
                tm = max(8, (tm // 2) // 8 * 8)
            while tp > 128 and vmem_bytes(tm, tp) > _VMEM_BUDGET:
                tp //= 2
    assert tm % 8 == 0 and tp % 128 == 0
    return tm, tp


def _cvx_kernel(x_ref, s_ref, u_ref, o_ref, b_ref, *, num_classes, d):
    """One grid step = (row tile i, neuron tile j).

    x_ref: (TM, d)     bf16  rows are flattened (n, k) pairs
    s_ref: (TM, TP)    bf16  sign patterns for this row/neuron tile
    u_ref: (TP, C*d)   bf16  (v - w) as (P, C, d) flattened (class-major chunks)
    o_ref: (TM, C)     f32   output for this row tile (written at last j)
    b_ref: (TM, C*d)   f32   scratch: B accumulated over neuron tiles
    """
    j = pl.program_id(1)

    @pl.when(j == 0)
    def _init():
        b_ref[...] = jnp.zeros_like(b_ref)

    # Single full-utilization MXU matmul: contraction over the neuron tile.
    b_ref[...] += jnp.dot(s_ref[...], u_ref[...],
                          preferred_element_type=jnp.float32)

    @pl.when(j == pl.num_programs(1) - 1)
    def _finalize():
        x_t = x_ref[...].astype(jnp.float32)               # (TM, d)
        b = b_ref[...]                                     # (TM, C*d)
        cls = jax.lax.broadcasted_iota(jnp.int32, (1, num_classes), 1)
        acc = jnp.zeros(o_ref.shape, jnp.float32)
        for c in range(num_classes):                       # C ~ 10, static unroll
            col = jnp.sum(x_t * b[:, c * d:(c + 1) * d], axis=-1, keepdims=True)
            acc = acc + jnp.where(cls == c, col, 0.0)      # place column c
        o_ref[...] = acc


def custom_cvx_layer_forward(x, sign_patterns, v, w, *, tm=None, tp=None):
    """Pallas forward matching custom_cvx_layer.forward.  Returns (N, C) f32."""
    N, K, d = x.shape
    P, _, C = v.shape
    M = N * K
    Cd = C * d

    TM, TP = _choose_tiles(M, P, d, C, tm, tp)
    Mp = _round_up(M, TM)
    Pp = _round_up(P, TP)

    # Plain-JAX glue: layout, bf16 cast, zero padding (one-time, negligible).
    x_flat = x.reshape(M, d).astype(jnp.bfloat16)                    # (M, d)
    s_flat = sign_patterns.reshape(M, P).astype(jnp.bfloat16)        # (M, P), {0,1} exact
    u2 = jnp.transpose((v - w).astype(jnp.bfloat16), (0, 2, 1))      # (P, C, d)
    u2 = u2.reshape(P, Cd)                                           # class-major chunks of d

    if Mp != M:
        x_flat = jnp.pad(x_flat, ((0, Mp - M), (0, 0)))
        s_flat = jnp.pad(s_flat, ((0, Mp - M), (0, 0)))
    if Pp != P:
        s_flat = jnp.pad(s_flat, ((0, 0), (0, Pp - P)))
        u2 = jnp.pad(u2, ((0, Pp - P), (0, 0)))

    grid = (Mp // TM, Pp // TP)

    out = pl.pallas_call(
        functools.partial(_cvx_kernel, num_classes=C, d=d),
        out_shape=jax.ShapeDtypeStruct((Mp, C), jnp.float32),
        grid_spec=pltpu.PrefetchScalarGridSpec(
            num_scalar_prefetch=0,
            grid=grid,
            in_specs=[
                pl.BlockSpec((TM, d), lambda i, j: (i, 0)),     # x rows (fetched once per i)
                pl.BlockSpec((TM, TP), lambda i, j: (i, j)),    # sign patterns (dominant stream)
                pl.BlockSpec((TP, Cd), lambda i, j: (j, 0)),    # (v - w) panel
            ],
            out_specs=pl.BlockSpec((TM, C), lambda i, j: (i, 0)),
            scratch_shapes=[pltpu.VMEM((TM, Cd), jnp.float32)],
        ),
        compiler_params=pltpu.CompilerParams(
            # Row tiles are independent (megacore-friendly); neuron tiles reduce.
            dimension_semantics=("parallel", "arbitrary"),
        ),
    )(x_flat, s_flat, u2)

    # Tiny epilogue in plain JAX: drop row padding, reduce over patches K.
    # TODO(synk): for very large d*num_classes the (v-w) panel / B scratch would
    # need an extra grid axis over the class-feature dim; unnecessary at these sizes.
    return out[:M].reshape(N, K, C).sum(axis=1)


def _reference(x, sign_patterns, v, w):
    """float64 einsum reference using the same bf16 operand rounding as the kernel."""
    xb = np.asarray(x.astype(jnp.bfloat16)).astype(np.float64)
    ub = np.asarray((v - w).astype(jnp.bfloat16)).astype(np.float64)
    sb = np.asarray(sign_patterns).astype(np.float64)
    return np.einsum("nkp,nkd,pdc->nc", sb, xb, ub, optimize=True)


if __name__ == "__main__":
    def run_case(N, K, d, P, C, key, tm=None, tp=None):
        kx, ks, kv, kw = jax.random.split(key, 4)
        x = jax.random.normal(kx, (N, K, d), dtype=jnp.float32)
        sign_patterns = (jax.random.uniform(ks, (N, K, P)) > 0.5).astype(jnp.float32)
        v = 0.01 * jax.random.normal(kv, (P, d, C), dtype=jnp.float32)
        w = 0.01 * jax.random.normal(kw, (P, d, C), dtype=jnp.float32)

        fwd = jax.jit(functools.partial(custom_cvx_layer_forward, tm=tm, tp=tp))
        y = fwd(x, sign_patterns, v, w)
        jax.block_until_ready(y)

        np.testing.assert_allclose(np.asarray(y), _reference(x, sign_patterns, v, w),
                                   rtol=2e-3, atol=2e-3)

    key = jax.random.PRNGKey(0)
    k1, k2, k3 = jax.random.split(key, 3)
    # Small shapes consistent with the module (single-tile fast path).
    run_case(N=8, K=4, d=16, P=8, C=10, key=k1)
    # Larger single-tile case: the whole (v - w) panel stays resident in VMEM.
    run_case(N=64, K=8, d=32, P=640, C=10, key=k2)
    # Forced small tiles: exercises row/neuron tiling, padding and B accumulation.
    run_case(N=50, K=7, d=24, P=300, C=10, key=k3, tm=128, tp=128)

    print("KERNEL_OK")
</pallas_src>

<mosaic_0001>
module attributes {stable_mosaic.version = 11 : i64} {
  func.func @_cvx_kernel(%arg0: i32, %arg1: i32, %arg2: memref<32x16xbf16, #tpu.memory_space<vmem>>, %arg3: memref<32x128xbf16, #tpu.memory_space<vmem>>, %arg4: memref<128x160xbf16, #tpu.memory_space<vmem>>, %arg5: memref<32x10xf32, #tpu.memory_space<vmem>>, %arg6: memref<32x160xf32, #tpu.memory_space<vmem>>) attributes {dimension_semantics = [#tpu.dimension_semantics<parallel>, #tpu.dimension_semantics<arbitrary>], iteration_bounds = array<i64: 1, 1>, scalar_prefetch = 0 : i64, scratch_operands = 1 : i64, tpu.core_type = #tpu.core_type<tc>, window_params = [{transform_indices = @transform_0, window_bounds = array<i64: 32, 16>}, {transform_indices = @transform_1, window_bounds = array<i64: 32, 128>}, {transform_indices = @transform_2, window_bounds = array<i64: 128, 160>}, {transform_indices = @transform_3, window_bounds = array<i64: 32, 10>}]} {
    %c0_i32 = arith.constant 0 : i32
    %0 = arith.cmpi eq, %arg1, %c0_i32 : i32
    %1 = arith.extui %0 : i1 to i32
    %c0_i32_0 = arith.constant 0 : i32
    %2 = arith.cmpi ne, %1, %c0_i32_0 : i32
    scf.if %2 {
      %cst_10 = arith.constant 0.000000e+00 : f32
      %12 = vector.broadcast %cst_10 : f32 to vector<32x160xf32>
      %c0_11 = arith.constant 0 : index
      %c0_12 = arith.constant 0 : index
      %13 = vector.load %arg6[%c0_11, %c0_12] : memref<32x160xf32, #tpu.memory_space<vmem>>, vector<32x160xf32>
      tpu.vector_store %arg6[%c0_11, %c0_12], %12 {strides = array<i32>} : memref<32x160xf32, #tpu.memory_space<vmem>>, vector<32x160xf32>,
    } else {
    }
    %c0 = arith.constant 0 : index
    %c0_1 = arith.constant 0 : index
    %3 = vector.load %arg6[%c0, %c0_1] : memref<32x160xf32, #tpu.memory_space<vmem>>, vector<32x160xf32>
    %c0_2 = arith.constant 0 : index
    %c0_3 = arith.constant 0 : index
    %4 = vector.load %arg3[%c0_2, %c0_3] : memref<32x128xbf16, #tpu.memory_space<vmem>>, vector<32x128xbf16>
    %c0_4 = arith.constant 0 : index
    %c0_5 = arith.constant 0 : index
    %5 = vector.load %arg4[%c0_4, %c0_5] : memref<128x160xbf16, #tpu.memory_space<vmem>>, vector<128x160xbf16>
    %cst = arith.constant dense<0.000000e+00> : vector<32x160xf32>
    %6 = tpu.matmul %4, %5, %cst {dimension_numbers = #tpu.dot_dimension_numbers<[1], [0], [0], [1], [0, 0, 1, 1], [], []>} : vector<32x128xbf16>, vector<128x160xbf16>, vector<32x160xf32> -> vector<32x160xf32>
    %7 = arith.addf %3, %6 : vector<32x160xf32>
    %c0_6 = arith.constant 0 : index
    %c0_7 = arith.constant 0 : index
    %8 = vector.load %arg6[%c0_6, %c0_7] : memref<32x160xf32, #tpu.memory_space<vmem>>, vector<32x160xf32>
    tpu.vector_store %arg6[%c0_6, %c0_7], %7 {strides = array<i32>} : memref<32x160xf32, #tpu.memory_space<vmem>>, vector<32x160xf32>,
    %c0_i32_8 = arith.constant 0 : i32
    %9 = arith.cmpi eq, %arg1, %c0_i32_8 : i32
    %10 = arith.extui %9 : i1 to i32
    %c0_i32_9 = arith.constant 0 : i32
    %11 = arith.cmpi ne, %10, %c0_i32_9 : i32
    scf.if %11 {
      %c0_10 = arith.constant 0 : index
      %c0_11 = arith.constant 0 : index
      %12 = vector.load %arg2[%c0_10, %c0_11] : memref<32x16xbf16, #tpu.memory_space<vmem>>, vector<32x16xbf16>
      %13 = arith.extf %12 : vector<32x16xbf16> to vector<32x16xf32>
      %c0_12 = arith.constant 0 : index
      %c0_13 = arith.constant 0 : index
      %14 = vector.load %arg6[%c0_12, %c0_13] : memref<32x160xf32, #tpu.memory_space<vmem>>, vector<32x160xf32>
      %15 = tpu.iota {dimensions = array<i32: 1>} : vector<1x10xi32>
      %cst_14 = arith.constant 0.000000e+00 : f32
      %16 = vector.broadcast %cst_14 : f32 to vector<32x10xf32>
      %17 = vector.extract_strided_slice %14 {offsets = [0, 0], sizes = [32, 16], strides = [1, 1]} : vector<32x160xf32> to vector<32x16xf32>
      %18 = arith.mulf %13, %17 : vector<32x16xf32>
      %cst_15 = arith.constant dense<0.000000e+00> : vector<32xf32>
      %19 = vector.multi_reduction <add>, %18, %cst_15 [1] : vector<32x16xf32> to vector<32xf32>
      %20 = vector.shape_cast %19 : vector<32xf32> to vector<32x1xf32>
      %c0_i32_16 = arith.constant 0 : i32
      %21 = vector.broadcast %c0_i32_16 : i32 to vector<1x10xi32>
      %22 = arith.cmpi eq, %15, %21 : vector<1x10xi32>
      %cst_17 = arith.constant 0.000000e+00 : f32
      %23 = vector.shape_cast %22 : vector<1x10xi1> to vector<1x10xi1>
      %24 = vector.broadcast %23 : vector<1x10xi1> to vector<32x10xi1>
      %25 = vector.shape_cast %20 : vector<32x1xf32> to vector<32x1xf32>
      %26 = vector.broadcast %25 : vector<32x1xf32> to vector<32x10xf32>
      %27 = vector.broadcast %cst_17 : f32 to vector<32x10xf32>
      %28 = arith.select %24, %26, %27 : vector<32x10xi1>, vector<32x10xf32>
      %29 = arith.addf %16, %28 : vector<32x10xf32>
      %30 = vector.extract_strided_slice %14 {offsets = [0, 16], sizes = [32, 16], strides = [1, 1]} : vector<32x160xf32> to vector<32x16xf32>
      %31 = arith.mulf %13, %30 : vector<32x16xf32>
      %cst_18 = arith.constant dense<0.000000e+00> : vector<32xf32>
      %32 = vector.multi_reduction <add>, %31, %cst_18 [1] : vector<32x16xf32> to vector<32xf32>
      %33 = vector.shape_cast %32 : vector<32xf32> to vector<32x1xf32>
      %c1_i32 = arith.constant 1 : i32
      %34 = vector.broadcast %c1_i32 : i32 to vector<1x10xi32>
      %35 = arith.cmpi eq, %15, %34 : vector<1x10xi32>
      %cst_19 = arith.constant 0.000000e+00 : f32
      %36 = vector.shape_cast %35 : vector<1x10xi1> to vector<1x10xi1>
      %37 = vector.broadcast %36 : vector<1x10xi1> to vector<32x10xi1>
      %38 = vector.shape_cast %33 : vector<32x1xf32> to vector<32x1xf32>
      %39 = vector.broadcast %38 : vector<32x1xf32> to vector<32x10xf32>
      %40 = vector.broadcast %cst_19 : f32 to vector<32x10xf32>
      %41 = arith.select %37, %39, %40 : vector<32x10xi1>, vector<32x10xf32>
      %42 = arith.addf %29, %41 : vector<32x10xf32>
      %43 = vector.extract_strided_slice %14 {offsets = [0, 32], sizes = [32, 16], strides = [1, 1]} : vector<32x160xf32> to vector<32x16xf32>
      %44 = arith.mulf %13, %43 : vector<32x16xf32>
      %cst_20 = arith.constant dense<0.000000e+00> : vector<32xf32>
      %45 = vector.multi_reduction <add>, %44, %cst_20 [1] : vector<32x16xf32> to vector<32xf32>
      %46 = vector.shape_cast %45 : vector<32xf32> to vector<32x1xf32>
      %c2_i32 = arith.constant 2 : i32
      %47 = vector.broadcast %c2_i32 : i32 to vector<1x10xi32>
      %48 = arith.cmpi eq, %15, %47 : vector<1x10xi32>
      %cst_21 = arith.constant 0.000000e+00 : f32
      %49 = vector.shape_cast %48 : vector<1x10xi1> to vector<1x10xi1>
      %50 = vector.broadcast %49 : vector<1x10xi1> to vector<32x10xi1>
      %51 = vector.shape_cast %46 : vector<32x1xf32> to vector<32x1xf32>
      %52 = vector.broadcast %51 : vector<32x1xf32> to vector<32x10xf32>
      %53 = vector.broadcast %cst_21 : f32 to vector<32x10xf32>
      %54 = arith.select %50, %52, %53 : vector<32x10xi1>, vector<32x10xf32>
      %55 = arith.addf %42, %54 : vector<32x10xf32>
      %56 = vector.extract_strided_slice %14 {offsets = [0, 48], sizes = [32, 16], strides = [1, 1]} : vector<32x160xf32> to vector<32x16xf32>
      %57 = arith.mulf %13, %56 : vector<32x16xf32>
      %cst_22 = arith.constant dense<0.000000e+00> : vector<32xf32>
      %58 = vector.multi_reduction <add>, %57, %cst_22 [1] : vector<32x16xf32> to vector<32xf32>
      %59 = vector.shape_cast %58 : vector<32xf32> to vector<32x1xf32>
      %c3_i32 = arith.constant 3 : i32
      %60 = vector.broadcast %c3_i32 : i32 to vector<1x10xi32>
      %61 = arith.cmpi eq, %15, %60 : vector<1x10xi32>
      %cst_23 = arith.constant 0.000000e+00 : f32
      %62 = vector.shape_cast %61 : vector<1x10xi1> to vector<1x10xi1>
      %63 = vector.broadcast %62 : vector<1x10xi1> to vector<32x10xi1>
      %64 = vector.shape_cast %59 : vector<32x1xf32> to vector<32x1xf32>
      %65 = vector.broadcast %64 : vector<32x1xf32> to vector<32x10xf32>
      %66 = vector.broadcast %cst_23 : f32 to vector<32x10xf32>
      %67 = arith.select %63, %65, %66 : vector<32x10xi1>, vector<32x10xf32>
      %68 = arith.addf %55, %67 : vector<32x10xf32>
      %69 = vector.extract_strided_slice %14 {offsets = [0, 64], sizes = [32, 16], strides = [1, 1]} : vector<32x160xf32> to vector<32x16xf32>
      %70 = arith.mulf %13, %69 : vector<32x16xf32>
      %cst_24 = arith.constant dense<0.000000e+00> : vector<32xf32>
      %71 = vector.multi_reduction <add>, %70, %cst_24 [1] : vector<32x16xf32> to vector<32xf32>
      %72 = vector.shape_cast %71 : vector<32xf32> to vector<32x1xf32>
      %c4_i32 = arith.constant 4 : i32
      %73 = vector.broadcast %c4_i32 : i32 to vector<1x10xi32>
      %74 = arith.cmpi eq, %15, %73 : vector<1x10xi32>
      %cst_25 = arith.constant 0.000000e+00 : f32
      %75 = vector.shape_cast %74 : vector<1x10xi1> to vector<1x10xi1>
      %76 = vector.broadcast %75 : vector<1x10xi1> to vector<32x10xi1>
      %77 = vector.shape_cast %72 : vector<32x1xf32> to vector<32x1xf32>
      %78 = vector.broadcast %77 : vector<32x1xf32> to vector<32x10xf32>
      %79 = vector.broadcast %cst_25 : f32 to vector<32x10xf32>
      %80 = arith.select %76, %78, %79 : vector<32x10xi1>, vector<32x10xf32>
      %81 = arith.addf %68, %80 : vector<32x10xf32>
      %82 = vector.extract_strided_slice %14 {offsets = [0, 80], sizes = [32, 16], strides = [1, 1]} : vector<32x160xf32> to vector<32x16xf32>
      %83 = arith.mulf %13, %82 : vector<32x16xf32>
      %cst_26 = arith.constant dense<0.000000e+00> : vector<32xf32>
      %84 = vector.multi_reduction <add>, %83, %cst_26 [1] : vector<32x16xf32> to vector<32xf32>
      %85 = vector.shape_cast %84 : vector<32xf32> to vector<32x1xf32>
      %c5_i32 = arith.constant 5 : i32
      %86 = vector.broadcast %c5_i32 : i32 to vector<1x10xi32>
      %87 = arith.cmpi eq, %15, %86 : vector<1x10xi32>
      %cst_27 = arith.constant 0.000000e+00 : f32
      %88 = vector.shape_cast %87 : vector<1x10xi1> to vector<1x10xi1>
      %89 = vector.broadcast %88 : vector<1x10xi1> to vector<32x10xi1>
      %90 = vector.shape_cast %85 : vector<32x1xf32> to vector<32x1xf32>
      %91 = vector.broadcast %90 : vector<32x1xf32> to vector<32x10xf32>
      %92 = vector.broadcast %cst_27 : f32 to vector<32x10xf32>
      %93 = arith.select %89, %91, %92 : vector<32x10xi1>, vector<32x10xf32>
      %94 = arith.addf %81, %93 : vector<32x10xf32>
      %95 = vector.extract_strided_slice %14 {offsets = [0, 96], sizes = [32, 16], strides = [1, 1]} : vector<32x160xf32> to vector<32x16xf32>
      %96 = arith.mulf %13, %95 : vector<32x16xf32>
      %cst_28 = arith.constant dense<0.000000e+00> : vector<32xf32>
      %97 = vector.multi_reduction <add>, %96, %cst_28 [1] : vector<32x16xf32> to vector<32xf32>
      %98 = vector.shape_cast %97 : vector<32xf32> to vector<32x1xf32>
      %c6_i32 = arith.constant 6 : i32
      %99 = vector.broadcast %c6_i32 : i32 to vector<1x10xi32>
      %100 = arith.cmpi eq, %15, %99 : vector<1x10xi32>
      %cst_29 = arith.constant 0.000000e+00 : f32
      %101 = vector.shape_cast %100 : vector<1x10xi1> to vector<1x10xi1>
      %102 = vector.broadcast %101 : vector<1x10xi1> to vector<32x10xi1>
      %103 = vector.shape_cast %98 : vector<32x1xf32> to vector<32x1xf32>
      %104 = vector.broadcast %103 : vector<32x1xf32> to vector<32x10xf32>
      %105 = vector.broadcast %cst_29 : f32 to vector<32x10xf32>
      %106 = arith.select %102, %104, %105 : vector<32x10xi1>, vector<32x10xf32>
      %107 = arith.addf %94, %106 : vector<32x10xf32>
      %108 = vector.extract_strided_slice %14 {offsets = [0, 112], sizes = [32, 16], strides = [1, 1]} : vector<32x160xf32> to vector<32x16xf32>
      %109 = arith.mulf %13, %108 : vector<32x16xf32>
      %cst_30 = arith.constant dense<0.000000e+00> : vector<32xf32>
      %110 = vector.multi_reduction <add>, %109, %cst_30 [1] : vector<32x16xf32> to vector<32xf32>
      %111 = vector.shape_cast %110 : vector<32xf32> to vector<32x1xf32>
      %c7_i32 = arith.constant 7 : i32
      %112 = vector.broadcast %c7_i32 : i32 to vector<1x10xi32>
      %113 = arith.cmpi eq, %15, %112 : vector<1x10xi32>
      %cst_31 = arith.constant 0.000000e+00 : f32
      %114 = vector.shape_cast %113 : vector<1x10xi1> to vector<1x10xi1>
      %115 = vector.broadcast %114 : vector<1x10xi1> to vector<32x10xi1>
      %116 = vector.shape_cast %111 : vector<32x1xf32> to vector<32x1xf32>
      %117 = vector.broadcast %116 : vector<32x1xf32> to vector<32x10xf32>
      %118 = vector.broadcast %cst_31 : f32 to vector<32x10xf32>
      %119 = arith.select %115, %117, %118 : vector<32x10xi1>, vector<32x10xf32>
      %120 = arith.addf %107, %119 : vector<32x10xf32>
      %121 = vector.extract_strided_slice %14 {offsets = [0, 128], sizes = [32, 16], strides = [1, 1]} : vector<32x160xf32> to vector<32x16xf32>
      %122 = arith.mulf %13, %121 : vector<32x16xf32>
      %cst_32 = arith.constant dense<0.000000e+00> : vector<32xf32>
      %123 = vector.multi_reduction <add>, %122, %cst_32 [1] : vector<32x16xf32> to vector<32xf32>
      %124 = vector.shape_cast %123 : vector<32xf32> to vector<32x1xf32>
      %c8_i32 = arith.constant 8 : i32
      %125 = vector.broadcast %c8_i32 : i32 to vector<1x10xi32>
      %126 = arith.cmpi eq, %15, %125 : vector<1x10xi32>
      %cst_33 = arith.constant 0.000000e+00 : f32
      %127 = vector.shape_cast %126 : vector<1x10xi1> to vector<1x10xi1>
      %128 = vector.broadcast %127 : vector<1x10xi1> to vector<32x10xi1>
      %129 = vector.shape_cast %124 : vector<32x1xf32> to vector<32x1xf32>
      %130 = vector.broadcast %129 : vector<32x1xf32> to vector<32x10xf32>
      %131 = vector.broadcast %cst_33 : f32 to vector<32x10xf32>
      %132 = arith.select %128, %130, %131 : vector<32x10xi1>, vector<32x10xf32>
      %133 = arith.addf %120, %132 : vector<32x10xf32>
      %134 = vector.extract_strided_slice %14 {offsets = [0, 144], sizes = [32, 16], strides = [1, 1]} : vector<32x160xf32> to vector<32x16xf32>
      %135 = arith.mulf %13, %134 : vector<32x16xf32>
      %cst_34 = arith.constant dense<0.000000e+00> : vector<32xf32>
      %136 = vector.multi_reduction <add>, %135, %cst_34 [1] : vector<32x16xf32> to vector<32xf32>
      %137 = vector.shape_cast %136 : vector<32xf32> to vector<32x1xf32>
      %c9_i32 = arith.constant 9 : i32
      %138 = vector.broadcast %c9_i32 : i32 to vector<1x10xi32>
      %139 = arith.cmpi eq, %15, %138 : vector<1x10xi32>
      %cst_35 = arith.constant 0.000000e+00 : f32
      %140 = vector.shape_cast %139 : vector<1x10xi1> to vector<1x10xi1>
      %141 = vector.broadcast %140 : vector<1x10xi1> to vector<32x10xi1>
      %142 = vector.shape_cast %137 : vector<32x1xf32> to vector<32x1xf32>
      %143 = vector.broadcast %142 : vector<32x1xf32> to vector<32x10xf32>
      %144 = vector.broadcast %cst_35 : f32 to vector<32x10xf32>
      %145 = arith.select %141, %143, %144 : vector<32x10xi1>, vector<32x10xf32>
      %146 = arith.addf %133, %145 : vector<32x10xf32>
      %c0_36 = arith.constant 0 : index
      %c0_37 = arith.constant 0 : index
      %147 = vector.load %arg5[%c0_36, %c0_37] : memref<32x10xf32, #tpu.memory_space<vmem>>, vector<32x10xf32>
      tpu.vector_store %arg5[%c0_36, %c0_37], %146 {strides = array<i32>} : memref<32x10xf32, #tpu.memory_space<vmem>>, vector<32x10xf32>,
    } else {
    }
    return
  }
  func.func @transform_0(%arg0: i32, %arg1: i32) -> (i32, i32) {
    %c0_i32 = arith.constant 0 : i32
    %c0_i32_0 = arith.constant 0 : i32
    return %arg0, %c0_i32 : i32, i32
  }
  func.func @transform_1(%arg0: i32, %arg1: i32) -> (i32, i32) {
    %c0_i32 = arith.constant 0 : i32
    return %arg0, %arg1 : i32, i32
  }
  func.func @transform_2(%arg0: i32, %arg1: i32) -> (i32, i32) {
    %c0_i32 = arith.constant 0 : i32
    %c0_i32_0 = arith.constant 0 : i32
    return %arg1, %c0_i32 : i32, i32
  }
  func.func @transform_3(%arg0: i32, %arg1: i32) -> (i32, i32) {
    %c0_i32 = arith.constant 0 : i32
    %c0_i32_0 = arith.constant 0 : i32
    return %arg0, %c0_i32 : i32, i32
  }
}

</mosaic_0001>

<bundles_post_ra>
// kernel: custom_cvx_layer_forward.1
= control target key start
LH: loop header
LB: loop body
LE: loop exit
PB: predicated region body
PF: predicated region fallthrough
CT: control target
= control target key end

     0   :  { %v701_v1 = vmov 0   ;;  %vm20_vm0 = vcmask 261120   ;;  %v702_v19 = vmov 0.0   ;;  %s705_s21 = smov 80   ;;  %s706_s22 = smov 64   ;;  %vm243_vm1 = vcmask 130048   ;;  %s1061_s2 = inlined_call_operand.vmem [shape: bf16[128,160], index: 2, kind: input, shape index: {}]   ;;  %s1062_s1 = inlined_call_operand.vmem [shape: bf16[32,128], index: 1, kind: input, shape index: {}]   ;;  %s1063_s0 = inlined_call_operand.vmem [shape: bf16[32,16], index: 0, kind: input, shape index: {}]   ;;  %s1064_s3 = inlined_call_operand.vmem [shape: f32[32,10], index: 3, kind: output, shape index: {}]  }
   0x1   :  { %v675_v0 = vld [vmem:[%s1061_s2 + $0x4] ss:$8 sps:$4 sm:$0xff]   ;;  %180 = vmatprep.mubr.bf16.mxu0 %v701_v1  ;;  %190 = vmatprep.mubr.bf16.mxu1 %v701_v1  ;;  %v677_v2 = vld [vmem:[%s1061_s2] ss:$8 sps:$4 sm:$0xff]   ;;  %v678_v3 = vld [vmem:[%s1061_s2 + $0x14] ss:$8 sps:$4 sm:$0xff]  }
   0x2   :  { %148 = vmatprep.subr.bf16.mxu0 %v675_v0  ;;  %650 = vmatprep.subr.bf16.mxu1 %v675_v0  ;;  %v680_v4 = vld [vmem:[%s1061_s2 + $0x10] ss:$8 sps:$4 sm:$0xff]   ;;  %v681_v5 = vld [vmem:[%s1061_s2 + $0x24] ss:$8 sps:$4 sm:$0xff]   ;;  %v683_v6 = vld [vmem:[%s1061_s2 + $0x20] ss:$8 sps:$4 sm:$0xff]  }
   0x3   :  { %149 = vmatpush1.bf16.msra.mxu0 %v677_v2  ;;  %658 = vmatpush1.bf16.msra.mxu1 %v677_v2  ;;  %v684_v7 = vld [vmem:[%s1061_s2 + $0x34] ss:$8 sps:$4 sm:$0xff]   ;;  %v686_v8 = vld [vmem:[%s1061_s2 + $0x30] ss:$8 sps:$4 sm:$0xff]   ;;  %v687_v9 = vld [vmem:[%s1061_s2 + $0x44] ss:$8 sps:$4 sm:$0xff]  }
   0x4   :  { %150 = vmatprep.subr.bf16.mxu0 %v678_v3  ;;  %651 = vmatprep.subr.bf16.mxu1 %v678_v3  ;;  %v689_v10 = vld [vmem:[%s1061_s2 + $0x40] ss:$8 sps:$4 sm:$0xff]   ;;  %v690_v11 = vld [vmem:[%s1061_s2 + $0x54] ss:$8 sps:$4 sm:$0xff]   ;;  %v692_v12 = vld [vmem:[%s1061_s2 + $0x50] ss:$8 sps:$4 sm:$0xff]  }
   0x5   :  { %v693_v13 = vld [vmem:[%s1061_s2 + $0x64] ss:$8 sps:$4 sm:$0xff]   ;;  %v695_v14 = vld [vmem:[%s1061_s2 + $0x60] ss:$8 sps:$4 sm:$0xff]   ;;  %v696_v15 = vld [vmem:[%s1061_s2 + $0x74] ss:$8 sps:$4 sm:$0xff]  }
   0x6   :  { %v698_v16 = vld [vmem:[%s1061_s2 + $0x70] ss:$8 sps:$4 sm:$0xff]   ;;  %v699_v17 = vld [vmem:[%s1062_s1] sm:$0xff]   ;;  %v700_v18 = vld [vmem:[%s1062_s1 + $0x8] sm:$0xff]   ;;  %25 = vst.msk [vmem:[#allocation2 + $0x28] sm:$0xff] %vm20_vm0, %v702_v19  ;;  %s703_s1 = smov 112  }
   0x7   :  { %151 = vmatpush1.bf16.msra.mxu0 %v680_v4  ;;  %659 = vmatpush1.bf16.msra.mxu1 %v680_v4  ;;  %21 = vst.msk [vmem:[#allocation2 + $0x8] sm:$0xff] %vm20_vm0, %v702_v19  ;;  %23 = vst.msk [vmem:[#allocation2 + $0x18] sm:$0xff] %vm20_vm0, %v702_v19  ;;  %s704_s2 = smov 96   ;;  %s707_s23 = smov 48   ;;  %v642_v38 = vld [vmem:[%s1063_s0] sm:$0xff]   ;;  %v859_v47 = vld [vmem:[%s1063_s0 + $0x8] sm:$0xff]  }
   0x8   :  { %152 = vmatprep.subr.bf16.mxu0 %v681_v5  ;;  %652 = vmatprep.subr.bf16.mxu1 %v681_v5  ;;  %27 = vst.msk [vmem:[#allocation2 + $0x38] sm:$0xff] %vm20_vm0, %v702_v19  ;;  %s708_s24 = smov 32   ;;  %s709_s25 = smov 16   ;;  %v827_v39 = vunpack.c.l.bf16 %v642_v38  ;;  %v835_v43 = vunpack.c.h.bf16 %v642_v38  ;;  %v862_v50 = vunpack.c.l.bf16 %v859_v47  ;;  %vm614_vm12 = vcmask 80896  }
   0xb   :  { %153 = vmatpush1.bf16.msra.mxu0 %v683_v6  ;;  %660 = vmatpush1.bf16.msra.mxu1 %v683_v6 }
   0xc   :  { %154 = vmatprep.subr.bf16.mxu0 %v684_v7  ;;  %653 = vmatprep.subr.bf16.mxu1 %v684_v7 }
   0xd   :  { %v33_v20 = vld [vmem:[#allocation2 + $0x28] sm:$0xff] }
   0xe   :  { %v29_v21 = vld [vmem:[#allocation2 + $0x8] sm:$0xff]  ;;  %v31_v27 = vld [vmem:[#allocation2 + $0x18] sm:$0xff] }
   0xf   :  { %155 = vmatpush1.bf16.msra.mxu0 %v686_v8  ;;  %661 = vmatpush1.bf16.msra.mxu1 %v686_v8  ;;  %v35_v25 = vld [vmem:[#allocation2 + $0x38] sm:$0xff] }
  0x10   :  { %156 = vmatprep.subr.bf16.mxu0 %v687_v9  ;;  %654 = vmatprep.subr.bf16.mxu1 %v687_v9 }
  0x13   :  { %157 = vmatpush1.bf16.msra.mxu0 %v689_v10  ;;  %662 = vmatpush1.bf16.msra.mxu1 %v689_v10 }
  0x14   :  { %158 = vmatprep.subr.bf16.mxu0 %v690_v11  ;;  %655 = vmatprep.subr.bf16.mxu1 %v690_v11 }
  0x17   :  { %159 = vmatpush1.bf16.msra.mxu0 %v692_v12  ;;  %663 = vmatpush1.bf16.msra.mxu1 %v692_v12 }
  0x18   :  { %160 = vmatprep.subr.bf16.mxu0 %v693_v13  ;;  %656 = vmatprep.subr.bf16.mxu1 %v693_v13 }
  0x1b   :  { %161 = vmatpush1.bf16.msra.mxu0 %v695_v14  ;;  %664 = vmatpush1.bf16.msra.mxu1 %v695_v14 }
  0x1c   :  { %162 = vmatprep.subr.bf16.mxu0 %v696_v15  ;;  %657 = vmatprep.subr.bf16.mxu1 %v696_v15 }
  0x1f   :  { %163 = vmatpush1.bf16.msra.mxu0 %v698_v16  ;;  %665 = vmatpush1.bf16.msra.mxu1 %v698_v16 }
  0x22   :  { %181 = vmatmul.mubr.bf16.vlgmr.msra.gmra.mrb[0].mxu0 %v699_v17  ;;  %191 = vmatmul.mubr.bf16.vlgmr.msra.gmra.mrb[0].mxu1 %v700_v18 }
  0xf5   :  { %v182_v22 = vpop.f32.mrb[0].mxu0  ;;  %v788_v23 = vpop.f32.mrb[0].mxu1 }
  0xf6   :  { %v194_v24 = vpop.f32.mrb[1].mxu1  ;;  %v184_v26 = vpop.f32.mrb[1].mxu0  ;;  %275 = vrot.lane.b32.xlu1 %v788_v23, %s703_s1  ;;  %271 = vrot.lane.b32.xlu0 %v182_v22, %s703_s1  ;;  %v239_v40 = vmul.f32 %v827_v39, %v182_v22  ;;  %v241_v60 = vmul.f32 %v862_v50, %v788_v23 }
  0xf7   :  { %v206_v28 = vadd.f32 %v194_v24, %v33_v20  ;;  %v790_v29 = vpop.f32.mrb[2].mxu1  ;;  %v202_v30 = vadd.f32 %v184_v26, %v29_v21  ;;  %v186_v31 = vpop.f32.mrb[2].mxu0 }
  0xf8   :  { %v198_v32 = vpop.f32.mrb[3].mxu1  ;;  %v188_v33 = vpop.f32.mrb[3].mxu0  ;;  %v244_v41 = vsel %vm243_vm1, %v239_v40, 0.0  ;;  %v240_v45 = vmul.f32 %v835_v43, %v186_v31  ;;  %v250_v1 = vsel %vm243_vm1, %v241_v60, 0.0 }
  0xf9   :  { %215 = vst.msk [vmem:[#allocation2 + $0x28] sm:$0xff] %vm20_vm0, %v206_v28  ;;  %v208_v34 = vadd.f32 %v198_v32, %v35_v25  ;;  %211 = vst.msk [vmem:[#allocation2 + $0x8] sm:$0xff] %vm20_vm0, %v202_v30  ;;  %v204_v35 = vadd.f32 %v188_v33, %v31_v27 }
  0xfa   :  { %314 = vrot.lane.b32.xlu1 %v788_v23, %s704_s2  ;;  %310 = vrot.lane.b32.xlu0 %v182_v22, %s704_s2  ;;  %v247_v46 = vsel %vm243_vm1, %v240_v45, 0.0 }
  0xfb   :  { %217 = vst.msk [vmem:[#allocation2 + $0x38] sm:$0xff] %vm20_vm0, %v208_v34  ;;  %213 = vst.msk [vmem:[#allocation2 + $0x18] sm:$0xff] %vm20_vm0, %v204_v35 }
  0xfe   :  { %353 = vrot.lane.b32.xlu1 %v788_v23, %s705_s21  ;;  %349 = vrot.lane.b32.xlu0 %v182_v22, %s705_s21 }
 0x100   :  { %v230_v36 = vld [vmem:[#allocation2 + $0x8] sm:$0xff] }
 0x101   :  { %v820_v37 = vld [vmem:[#allocation2 + $0x28] sm:$0xff]  ;;  %v544_v42 = vmul.f32 %v827_v39, %v230_v36 }
 0x102   :  { %392 = vrot.lane.b32.xlu1 %v788_v23, %s706_s22  ;;  %388 = vrot.lane.b32.xlu0 %v182_v22, %s706_s22  ;;  %v232_v15 = vld [vmem:[#allocation2 + $0x18] sm:$0xff] }
 0x103   :  { %v548_v44 = vsel %vm243_vm1, %v544_v42, 0.0  ;;  %v885_v19 = vld [vmem:[#allocation2 + $0x38] sm:$0xff] }
 0x106   :  { %431 = vrot.lane.b32.xlu1 %v788_v23, %s707_s23  ;;  %427 = vrot.lane.b32.xlu0 %v182_v22, %s707_s23 }
 0x10a   :  { %466 = vrot.lane.b32.xlu1 %v182_v22, %s708_s24  ;;  %511 = vrot.lane.b32.xlu0 %v790_v29, %s709_s25 }
 0x10e   :  { %470 = vrot.lane.b32.xlu1 %v788_v23, %s708_s24 }
 0x112   :  { %505 = vrot.lane.b32.xlu1 %v182_v22, %s709_s25 }
 0x116   :  { %509 = vrot.lane.b32.xlu1 %v788_v23, %s709_s25 }
 0x11a   :  { %575 = vrot.lane.b32.xlu1 %v230_v36, %s703_s1  ;;  %v900_v36 = vunpack.c.h.bf16 %v859_v47 }
 0x11c   :  { %v242_v47 = vmul.f32 %v900_v36, %v790_v29 }
 0x11e   :  { %579 = vrot.lane.b32.xlu1 %v820_v37, %s703_s1 }
 0x122   :  { %273 = vrot.lane.b32.xlu1 %v186_v31, %s703_s1 }
 0x126   :  { %277 = vrot.lane.b32.xlu1 %v790_v29, %s703_s1 }
 0x129   :  { %245 = vadd.xlane.f32.xlu0 %v244_v41 }
 0x12a   :  { %312 = vrot.lane.b32.xlu1 %v186_v31, %s704_s2 }
 0x12d   :  { %549 = vadd.xlane.f32.xlu0 %v548_v44 }
 0x12e   :  { %316 = vrot.lane.b32.xlu1 %v790_v29, %s704_s2 }
 0x131   :  { %248 = vadd.xlane.f32.xlu0 %v247_v46 }
 0x132   :  { %351 = vrot.lane.b32.xlu1 %v186_v31, %s705_s21 }
 0x136   :  { %355 = vrot.lane.b32.xlu1 %v790_v29, %s705_s21 }
 0x13a   :  { %390 = vrot.lane.b32.xlu1 %v186_v31, %s706_s22 }
 0x13e   :  { %394 = vrot.lane.b32.xlu1 %v790_v29, %s706_s22 }
 0x142   :  { %429 = vrot.lane.b32.xlu1 %v186_v31, %s707_s23 }
 0x146   :  { %433 = vrot.lane.b32.xlu1 %v790_v29, %s707_s23 }
 0x14a   :  { %468 = vrot.lane.b32.xlu1 %v186_v31, %s708_s24 }
 0x14e   :  { %472 = vrot.lane.b32.xlu1 %v790_v29, %s708_s24  ;;  %v546_v29 = vmul.f32 %v862_v50, %v820_v37 }
 0x152   :  { %507 = vrot.lane.b32.xlu1 %v186_v31, %s709_s25 }
 0x168   :  { %v276_v48 = vpop.permute.xlu1 %275  ;;  %v272_v49 = vpop.permute.xlu0 %271 }
 0x169   :  { %v283_v51 = vmul.f32 %v827_v39, %v272_v49  ;;  %v285_v52 = vmul.f32 %v862_v50, %v276_v48 }
 0x16b   :  { %v287_v53 = vsel %vm243_vm1, %v283_v51, 0.0  ;;  %v293_v57 = vsel %vm243_vm1, %v285_v52, 0.0 }
 0x16c   :  { %v315_v54 = vpop.permute.xlu1 %314  ;;  %v311_v55 = vpop.permute.xlu0 %310  ;;  %288 = vadd.xlane.f32.xlu0 %v287_v53  ;;  %v253_v53 = vsel %vm243_vm1, %v242_v47, 0.0 }
 0x16d   :  { %v322_v56 = vmul.f32 %v827_v39, %v311_v55  ;;  %v324_v61 = vmul.f32 %v862_v50, %v315_v54  ;;  %v545_v54 = vmul.f32 %v835_v43, %v232_v15 }
 0x16f   :  { %v326_v59 = vsel %vm243_vm1, %v322_v56, 0.0  ;;  %v332_v2 = vsel %vm243_vm1, %v324_v61, 0.0 }
 0x170   :  { %v354_v58 = vpop.permute.xlu1 %353  ;;  %294 = vadd.xlane.f32.xlu0 %v293_v57  ;;  %v350_v62 = vpop.permute.xlu0 %349 }
 0x171   :  { %v361_v0 = vmul.f32 %v827_v39, %v350_v62  ;;  %v363_v5 = vmul.f32 %v862_v50, %v354_v58  ;;  %v551_v58 = vsel %vm243_vm1, %v545_v54, 0.0 }
 0x173   :  { %v365_v4 = vsel %vm243_vm1, %v361_v0, 0.0  ;;  %v371_v9 = vsel %vm243_vm1, %v363_v5, 0.0  ;;  %v554_v0 = vsel %vm243_vm1, %v546_v29, 0.0 }
 0x174   :  { %v393_v63 = vpop.permute.xlu1 %392  ;;  %327 = vadd.xlane.f32.xlu0 %v326_v59  ;;  %v389_v7 = vpop.permute.xlu0 %388 }
 0x175   :  { %v400_v8 = vmul.f32 %v827_v39, %v389_v7  ;;  %v402_v11 = vmul.f32 %v862_v50, %v393_v63 }
 0x176   :  { %251 = vadd.xlane.f32.xlu1 %v250_v1 }
 0x177   :  { %v404_v12 = vsel %vm243_vm1, %v400_v8, 0.0  ;;  %v410_v17 = vsel %vm243_vm1, %v402_v11, 0.0 }
 0x178   :  { %v432_v3 = vpop.permute.xlu1 %431  ;;  %333 = vadd.xlane.f32.xlu0 %v332_v2  ;;  %v428_v14 = vpop.permute.xlu0 %427 }
 0x179   :  { %v439_v16 = vmul.f32 %v827_v39, %v428_v14  ;;  %v441_v20 = vmul.f32 %v862_v50, %v432_v3 }
 0x17b   :  { %v443_v21 = vsel %vm243_vm1, %v439_v16, 0.0  ;;  %v449_v24 = vsel %vm243_vm1, %v441_v20, 0.0 }
 0x17c   :  { %v467_v6 = vpop.permute.xlu1 %466  ;;  %366 = vadd.xlane.f32.xlu0 %v365_v4  ;;  %v512_v20 = vpop.permute.xlu0 %511 }
 0x17d   :  { %v478_v23 = vmul.f32 %v827_v39, %v467_v6 }
 0x17f   :  { %v482_v27 = vsel %vm243_vm1, %v478_v23, 0.0 }
 0x180   :  { %v471_v10 = vpop.permute.xlu1 %470  ;;  %372 = vadd.xlane.f32.xlu0 %v371_v9 }
 0x181   :  { %v480_v26 = vmul.f32 %v862_v50, %v471_v10 }
 0x183   :  { %v488_v31 = vsel %vm243_vm1, %v480_v26, 0.0 }
 0x184   :  { %v506_v13 = vpop.permute.xlu1 %505  ;;  %405 = vadd.xlane.f32.xlu0 %v404_v12 }
 0x185   :  { %v517_v30 = vmul.f32 %v827_v39, %v506_v13 }
 0x187   :  { %577 = vrot.lane.b32.xlu1 %v232_v15, %s703_s1  ;;  %v521_v34 = vsel %vm243_vm1, %v517_v30, 0.0 }
 0x188   :  { %v510_v18 = vpop.permute.xlu1 %509  ;;  %411 = vadd.xlane.f32.xlu0 %v410_v17 }
 0x189   :  { %v519_v33 = vmul.f32 %v862_v50, %v510_v18 }
 0x18b   :  { %581 = vrot.lane.b32.xlu1 %v885_v19, %s703_s1  ;;  %v527_v40 = vsel %vm243_vm1, %v519_v33, 0.0 }
 0x18c   :  { %v576_v22 = vpop.permute.xlu1 %575  ;;  %444 = vadd.xlane.f32.xlu0 %v443_v21  ;;  %v520_v21 = vmul.f32 %v900_v36, %v512_v20 }
 0x18d   :  { %v587_v62 = vmul.f32 %v827_v39, %v576_v22 }
 0x18e   :  { %v530_v23 = vsel %vm243_vm1, %v520_v21, 0.0 }
 0x18f   :  { %v591_v37 = vsel %vm243_vm1, %v587_v62, 0.0 }
 0x190   :  { %v580_v25 = vpop.permute.xlu1 %579  ;;  %450 = vadd.xlane.f32.xlu0 %v449_v24  ;;  %v547_v24 = vmul.f32 %v900_v36, %v885_v19 }
 0x191   :  { %v589_v3 = vmul.f32 %v862_v50, %v580_v25 }
 0x192   :  { %v557_v25 = vsel %vm243_vm1, %v547_v24, 0.0 }
 0x193   :  { %v597_v6 = vsel %vm243_vm1, %v589_v3, 0.0 }
 0x194   :  { %v274_v28 = vpop.permute.xlu1 %273  ;;  %483 = vadd.xlane.f32.xlu0 %v482_v27 }
 0x195   :  { %v284_v57 = vmul.f32 %v835_v43, %v274_v28 }
 0x197   :  { %v290_v61 = vsel %vm243_vm1, %v284_v57, 0.0 }
 0x198   :  { %v278_v32 = vpop.permute.xlu1 %277  ;;  %489 = vadd.xlane.f32.xlu0 %v488_v31 }
 0x199   :  { %v286_v38 = vmul.f32 %v900_v36, %v278_v32 }
 0x19b   :  { %v296_v44 = vsel %vm243_vm1, %v286_v38, 0.0 }
 0x19c   :  { %v313_v35 = vpop.permute.xlu1 %312  ;;  %522 = vadd.xlane.f32.xlu0 %v521_v34 }
 0x19d   :  { %v323_v60 = vmul.f32 %v835_v43, %v313_v35 }
 0x19f   :  { %v329_v2 = vsel %vm243_vm1, %v323_v60, 0.0 }
 0x1a0   :  { %v317_v41 = vpop.permute.xlu1 %316  ;;  %528 = vadd.xlane.f32.xlu0 %v527_v40 }
 0x1a1   :  { %v325_v42 = vmul.f32 %v900_v36, %v317_v41 }
 0x1a3   :  { %v335_v46 = vsel %vm243_vm1, %v325_v42, 0.0 }
 0x1a4   :  { %v352_v45 = vpop.permute.xlu1 %351  ;;  %297 = vadd.xlane.f32.xlu0 %v296_v44 }
 0x1a5   :  { %v362_v1 = vmul.f32 %v835_v43, %v352_v45 }
 0x1a7   :  { %v368_v39 = vsel %vm243_vm1, %v362_v1, 0.0 }
 0x1a8   :  { %v356_v48 = vpop.permute.xlu1 %355  ;;  %336 = vadd.xlane.f32.xlu0 %v335_v46 }
 0x1a9   :  { %v364_v49 = vmul.f32 %v900_v36, %v356_v48  ;;  %v237_v48 = vlaneseq }
 0x1ab   :  { %v374_v51 = vsel %vm243_vm1, %v364_v49, 0.0  ;;  %v952_v47 = vand.u32 127, %v237_v48 }
 0x1ac   :  { %v391_v52 = vpop.permute.xlu1 %390  ;;  %375 = vadd.xlane.f32.xlu0 %v374_v51 }
 0x1ad   :  { %v401_v5 = vmul.f32 %v835_v43, %v391_v52  ;;  %vm299_vm2 = vcmp.eq.s32.totalorder %v952_v47, 1  ;;  %vm256_vm3 = vcmp.eq.s32.totalorder %v952_v47, 0  ;;  %vm338_vm4 = vcmp.eq.s32.totalorder %v952_v47, 2 }
 0x1ae   :  { %vm377_vm5 = vcmp.eq.s32.totalorder %v952_v47, 3  ;;  %vm416_vm6 = vcmp.eq.s32.totalorder %v952_v47, 4  ;;  %vm455_vm7 = vcmp.eq.s32.totalorder %v952_v47, 5  ;;  %vm494_vm8 = vcmp.eq.s32.totalorder %v952_v47, 6 }
 0x1af   :  { %254 = vadd.xlane.f32.xlu1 %v253_v53  ;;  %v407_v8 = vsel %vm243_vm1, %v401_v5, 0.0  ;;  %vm533_vm9 = vcmp.eq.s32.totalorder %v952_v47, 7  ;;  %vm560_vm10 = vcmp.eq.s32.totalorder %v952_v47, 8  ;;  %vm603_vm11 = vcmp.eq.s32.totalorder %v952_v47, 9 }
 0x1b0   :  { %v395_v55 = vpop.permute.xlu1 %394 }
 0x1b1   :  { %v403_v56 = vmul.f32 %v900_v36, %v395_v55 }
 0x1b3   :  { %552 = vadd.xlane.f32.xlu1 %v551_v58  ;;  %v413_v59 = vsel %vm243_vm1, %v403_v56, 0.0 }
 0x1b4   :  { %414 = vadd.xlane.f32.xlu0 %v413_v59  ;;  %v430_v63 = vpop.permute.xlu1 %429 }
 0x1b5   :  { %v440_v7 = vmul.f32 %v835_v43, %v430_v63 }
 0x1b6   :  { %v246_v26 = vpop.xlane.xlu0 %245 }
 0x1b7   :  { %291 = vadd.xlane.f32.xlu1 %v290_v61  ;;  %v446_v10 = vsel %vm243_vm1, %v440_v7, 0.0  ;;  %v259_v52 = vsel %vm256_vm3, %v246_v26, 0.0 }
 0x1b8   :  { %555 = vadd.xlane.f32.xlu0 %v554_v0  ;;  %v434_v4 = vpop.permute.xlu1 %433 }
 0x1b9   :  { %v442_v50 = vmul.f32 %v900_v36, %v434_v4 }
 0x1ba   :  { %v550_v27 = vpop.xlane.xlu0 %549 }
 0x1bb   :  { %330 = vadd.xlane.f32.xlu1 %v329_v2  ;;  %v452_v13 = vsel %vm243_vm1, %v442_v50, 0.0 }
 0x1bc   :  { %592 = vadd.xlane.f32.xlu0 %v591_v37  ;;  %v469_v9 = vpop.permute.xlu1 %468  ;;  %v563_v37 = vsel %vm560_vm10, %v550_v27, 0.0 }
 0x1bd   :  { %v479_v12 = vmul.f32 %v835_v43, %v469_v9 }
 0x1be   :  { %v946_v28 = vpop.xlane.xlu0 %248 }
 0x1bf   :  { %369 = vadd.xlane.f32.xlu1 %v368_v39  ;;  %v485_v15 = vsel %vm243_vm1, %v479_v12, 0.0 }
 0x1c0   :  { %598 = vadd.xlane.f32.xlu0 %v597_v6  ;;  %v473_v11 = vpop.permute.xlu1 %472 }
 0x1c1   :  { %v481_v14 = vmul.f32 %v900_v36, %v473_v11 }
 0x1c3   :  { %408 = vadd.xlane.f32.xlu1 %v407_v8  ;;  %v491_v18 = vsel %vm243_vm1, %v481_v14, 0.0 }
 0x1c4   :  { %v508_v16 = vpop.permute.xlu1 %507 }
 0x1c5   :  { %v518_v17 = vmul.f32 %v835_v43, %v508_v16 }
 0x1c7   :  { %447 = vadd.xlane.f32.xlu1 %v446_v10  ;;  %v524_v22 = vsel %vm243_vm1, %v518_v17, 0.0 }
 0x1cb   :  { %453 = vadd.xlane.f32.xlu1 %v452_v13 }
 0x1cf   :  { %486 = vadd.xlane.f32.xlu1 %v485_v15 }
 0x1d3   :  { %492 = vadd.xlane.f32.xlu1 %v491_v18 }
 0x1d7   :  { %525 = vadd.xlane.f32.xlu1 %v524_v22 }
 0x1db   :  { %531 = vadd.xlane.f32.xlu1 %v530_v23 }
 0x1df   :  { %558 = vadd.xlane.f32.xlu1 %v557_v25 }
 0x1f9   :  { %v289_v30 = vpop.xlane.xlu0 %288 }
 0x1fd   :  { %v295_v31 = vpop.xlane.xlu0 %294 }
 0x1fe   :  { %v304_v8 = vsel %vm299_vm2, %v295_v31, 0.0 }
 0x201   :  { %v328_v32 = vpop.xlane.xlu0 %327 }
 0x202   :  { %v341_v53 = vsel %vm338_vm4, %v328_v32, 0.0 }
 0x203   :  { %v252_v33 = vpop.xlane.xlu1 %251 }
 0x204   :  { %v261_v7 = vsel %vm256_vm3, %v252_v33, 0.0 }
 0x205   :  { %v334_v34 = vpop.xlane.xlu0 %333  ;;  %v308_v50 = vadd.f32 %v304_v8, %v261_v7 }
 0x206   :  { %v343_v13 = vsel %vm338_vm4, %v334_v34, 0.0 }
 0x207   :  { %v578_v35 = vpop.permute.xlu1 %577  ;;  %v347_v20 = vadd.f32 %v343_v13, %v308_v50 }
 0x208   :  { %v588_v38 = vmul.f32 %v835_v43, %v578_v35  ;;  %v302_v43 = vsel %vm299_vm2, %v289_v30, 0.0 }
 0x209   :  { %v367_v40 = vpop.xlane.xlu0 %366  ;;  %v306_v54 = vadd.f32 %v302_v43, %v259_v52 }
 0x20a   :  { %v594_v41 = vsel %vm243_vm1, %v588_v38, 0.0  ;;  %v380_v55 = vsel %vm377_vm5, %v367_v40, 0.0 }
 0x20b   :  { %v582_v19 = vpop.permute.xlu1 %581  ;;  %595 = vadd.xlane.f32.xlu1 %v594_v41  ;;  %v345_v56 = vadd.f32 %v341_v53, %v306_v54 }
 0x20c   :  { %v590_v42 = vmul.f32 %v900_v36, %v582_v19 }
 0x20d   :  { %v373_v44 = vpop.xlane.xlu0 %372  ;;  %v384_v59 = vadd.f32 %v380_v55, %v345_v56 }
 0x20e   :  { %v600_v45 = vsel %vm243_vm1, %v590_v42, 0.0  ;;  %v382_v16 = vsel %vm377_vm5, %v373_v44, 0.0 }
 0x20f   :  { %601 = vadd.xlane.f32.xlu1 %v600_v45  ;;  %v386_v26 = vadd.f32 %v382_v16, %v347_v20 }
 0x211   :  { %v406_v46 = vpop.xlane.xlu0 %405 }
 0x212   :  { %v419_v58 = vsel %vm416_vm6, %v406_v46, 0.0  ;;  %v260_v46 = vsel %vm256_vm3, %v946_v28, 0.0 }
 0x213   :  { %v423_v60 = vadd.f32 %v419_v58, %v384_v59 }
 0x215   :  { %v412_v49 = vpop.xlane.xlu0 %411 }
 0x216   :  { %v421_v23 = vsel %vm416_vm6, %v412_v49, 0.0 }
 0x217   :  { %v425_v32 = vadd.f32 %v421_v23, %v386_v26 }
 0x219   :  { %v445_v51 = vpop.xlane.xlu0 %444 }
 0x21a   :  { %v458_v29 = vsel %vm455_vm7, %v445_v51, 0.0 }
 0x21b   :  { %v462_v63 = vadd.f32 %v458_v29, %v423_v60 }
 0x21d   :  { %v451_v36 = vpop.xlane.xlu0 %450 }
 0x21e   :  { %v460_v27 = vsel %vm455_vm7, %v451_v36, 0.0 }
 0x21f   :  { %v464_v35 = vadd.f32 %v460_v27, %v425_v32 }
 0x221   :  { %v484_v57 = vpop.xlane.xlu0 %483 }
 0x222   :  { %v497_v62 = vsel %vm494_vm8, %v484_v57, 0.0 }
 0x223   :  { %v501_v0 = vadd.f32 %v497_v62, %v462_v63 }
 0x225   :  { %v490_v61 = vpop.xlane.xlu0 %489 }
 0x226   :  { %v499_v34 = vsel %vm494_vm8, %v490_v61, 0.0 }
 0x227   :  { %v503_v41 = vadd.f32 %v499_v34, %v464_v35 }
 0x229   :  { %v523_v1 = vpop.xlane.xlu0 %522 }
 0x22a   :  { %v536_v2 = vsel %vm533_vm9, %v523_v1, 0.0 }
 0x22b   :  { %v540_v3 = vadd.f32 %v536_v2, %v501_v0 }
 0x22d   :  { %v529_v4 = vpop.xlane.xlu0 %528  ;;  %v567_v5 = vadd.f32 %v563_v37, %v540_v3 }
 0x22e   :  { %v538_v38 = vsel %vm533_vm9, %v529_v4, 0.0 }
 0x22f   :  { %v542_v48 = vadd.f32 %v538_v38, %v503_v41 }
 0x231   :  { %v298_v39 = vpop.xlane.xlu0 %297 }
 0x232   :  { %v305_v10 = vsel %vm299_vm2, %v298_v39, 0.0 }
 0x235   :  { %v337_v6 = vpop.xlane.xlu0 %336 }
 0x236   :  { %v344_v15 = vsel %vm338_vm4, %v337_v6, 0.0 }
 0x239   :  { %v376_v11 = vpop.xlane.xlu0 %375 }
 0x23a   :  { %v383_v21 = vsel %vm377_vm5, %v376_v11, 0.0 }
 0x23c   :  { %v255_v9 = vpop.xlane.xlu1 %254 }
 0x23d   :  { %v262_v12 = vsel %vm256_vm3, %v255_v9, 0.0 }
 0x23e   :  { %v309_v14 = vadd.f32 %v305_v10, %v262_v12 }
 0x240   :  { %v348_v17 = vadd.f32 %v344_v15, %v309_v14  ;;  %v553_v18 = vpop.xlane.xlu1 %552 }
 0x241   :  { %v415_v22 = vpop.xlane.xlu0 %414  ;;  %v564_v12 = vsel %vm560_vm10, %v553_v18, 0.0 }
 0x242   :  { %v387_v24 = vadd.f32 %v383_v21, %v348_v17  ;;  %v422_v25 = vsel %vm416_vm6, %v415_v22, 0.0 }
 0x244   :  { %v426_v30 = vadd.f32 %v422_v25, %v387_v24  ;;  %v292_v31 = vpop.xlane.xlu1 %291 }
 0x245   :  { %v556_v33 = vpop.xlane.xlu0 %555  ;;  %v303_v19 = vsel %vm299_vm2, %v292_v31, 0.0 }
 0x246   :  { %v565_v44 = vsel %vm560_vm10, %v556_v33, 0.0  ;;  %v307_v43 = vadd.f32 %v303_v19, %v260_v46 }
 0x247   :  { %v569_v52 = vadd.f32 %v565_v44, %v542_v48 }
 0x248   :  { %v331_v40 = vpop.xlane.xlu1 %330 }
 0x249   :  { %v593_v42 = vpop.xlane.xlu0 %592  ;;  %v342_v49 = vsel %vm338_vm4, %v331_v40, 0.0 }
 0x24a   :  { %v606_v45 = vsel %vm603_vm11, %v593_v42, 0.0  ;;  %v346_v55 = vadd.f32 %v342_v49, %v307_v43 }
 0x24b   :  { %v610_v51 = vadd.f32 %v606_v45, %v567_v5 }
 0x24c   :  { %v370_v36 = vpop.xlane.xlu1 %369 }
 0x24d   :  { %615 = vst.msk [vmem:[%s1064_s3] sm:$0xff] %vm614_vm12, %v610_v51  ;;  %v381_v53 = vsel %vm377_vm5, %v370_v36, 0.0  ;;  %v599_v54 = vpop.xlane.xlu0 %598 }
 0x24e   :  { %v608_v28 = vsel %vm603_vm11, %v599_v54, 0.0  ;;  %v385_v57 = vadd.f32 %v381_v53, %v346_v55 }
 0x24f   :  { %v612_v56 = vadd.f32 %v608_v28, %v569_v52 }
 0x250   :  { %v409_v58 = vpop.xlane.xlu1 %408 }
 0x251   :  { %617 = vst.msk [vmem:[%s1064_s3 + $0x10] sm:$0xff] %vm614_vm12, %v612_v56  ;;  %v420_v59 = vsel %vm416_vm6, %v409_v58, 0.0 }
 0x252   :  { %v424_v29 = vadd.f32 %v420_v59, %v385_v57 }
 0x254   :  { %v448_v60 = vpop.xlane.xlu1 %447 }
 0x255   :  { %v459_v61 = vsel %vm455_vm7, %v448_v60, 0.0 }
 0x256   :  { %v463_v62 = vadd.f32 %v459_v61, %v424_v29 }
 0x258   :  { %v454_v63 = vpop.xlane.xlu1 %453 }
 0x259   :  { %v461_v0 = vsel %vm455_vm7, %v454_v63, 0.0 }
 0x25a   :  { %v465_v1 = vadd.f32 %v461_v0, %v426_v30 }
 0x25c   :  { %v487_v2 = vpop.xlane.xlu1 %486 }
 0x25d   :  { %v498_v3 = vsel %vm494_vm8, %v487_v2, 0.0 }
 0x25e   :  { %v502_v37 = vadd.f32 %v498_v3, %v463_v62 }
 0x260   :  { %v493_v4 = vpop.xlane.xlu1 %492 }
 0x261   :  { %v500_v5 = vsel %vm494_vm8, %v493_v4, 0.0 }
 0x262   :  { %v504_v39 = vadd.f32 %v500_v5, %v465_v1 }
 0x264   :  { %v526_v6 = vpop.xlane.xlu1 %525 }
 0x265   :  { %v537_v7 = vsel %vm533_vm9, %v526_v6, 0.0 }
 0x266   :  { %v541_v8 = vadd.f32 %v537_v7, %v502_v37 }
 0x268   :  { %v532_v9 = vpop.xlane.xlu1 %531  ;;  %v568_v14 = vadd.f32 %v564_v12, %v541_v8 }
 0x269   :  { %v539_v50 = vsel %vm533_vm9, %v532_v9, 0.0 }
 0x26a   :  { %v543_v10 = vadd.f32 %v539_v50, %v504_v39 }
 0x26c   :  { %v559_v11 = vpop.xlane.xlu1 %558 }
 0x26d   :  { %v566_v15 = vsel %vm560_vm10, %v559_v11, 0.0 }
 0x26e   :  { %v570_v20 = vadd.f32 %v566_v15, %v543_v10 }
 0x298   :  { %v596_v13 = vpop.xlane.xlu1 %595 }
 0x299   :  { %v607_v16 = vsel %vm603_vm11, %v596_v13, 0.0 }
 0x29a   :  { %v611_v17 = vadd.f32 %v607_v16, %v568_v14 }
 0x29c   :  { %616 = vst.msk [vmem:[%s1064_s3 + $0x8] sm:$0xff] %vm614_vm12, %v611_v17  ;;  %v602_v21 = vpop.xlane.xlu1 %601 }
 0x29d   :  { %v609_v22 = vsel %vm603_vm11, %v602_v21, 0.0 }
 0x29e   :  { %v613_v18 = vadd.f32 %v609_v22, %v570_v20 }
 0x2a0   :  { %618 = vst.msk [vmem:[%s1064_s3 + $0x18] sm:$0xff] %vm614_vm12, %v613_v18 }

</bundles_post_ra>
